<compile_context>
chip_gen: v6e
topology: v6e:2x2x1
jax: 0.10.0
libtpu: 0.0.40
codegen_flags: <defaults>
</compile_context>

<pallas_src>
from functools import partial

import jax
import jax.numpy as jnp
from jax.experimental import pallas as pl
from jax.experimental.pallas import tpu as pltpu


# ---------------------------------------------------------------------------
# Kernel
# ---------------------------------------------------------------------------
def mlp2c_kernel(x1_ref, x2_ref, w1_ref, b1_ref, w2_ref, b2_ref,
                 w3a_ref, w3b_ref, b3_ref, w4_ref, b4_ref, out_ref):
    cdt = w1_ref.dtype  # bf16 compute dtype for MXU operands
    x1 = x1_ref[...].astype(cdt)
    x2 = x2_ref[...].astype(cdt)

    # branch 1: relu(fc1(input1))
    h1 = jnp.dot(x1, w1_ref[...], preferred_element_type=jnp.float32)
    h1 = jnp.maximum(h1 + b1_ref[...], 0.0)
    # branch 2: relu(fc2(input2))
    h2 = jnp.dot(x2, w2_ref[...], preferred_element_type=jnp.float32)
    h2 = jnp.maximum(h2 + b2_ref[...], 0.0)

    # fc3(cat(h1, h2)) == h1 @ W3[:H] + h2 @ W3[H:]  (no in-kernel concat needed)
    z = (jnp.dot(h1.astype(cdt), w3a_ref[...], preferred_element_type=jnp.float32)
         + jnp.dot(h2.astype(cdt), w3b_ref[...], preferred_element_type=jnp.float32)
         + b3_ref[...])
    z = jnp.maximum(z, 0.0)

    # fc_out: store the true (tb, out_dim) block — no lane padding in HBM
    o = jnp.dot(z.astype(cdt), w4_ref[...],
                preferred_element_type=jnp.float32) + b4_ref[...]
    out_ref[...] = o.astype(out_ref.dtype)


# ---------------------------------------------------------------------------
# One-time parameter preparation (weight split + bf16 cast)
# ---------------------------------------------------------------------------
def prepare_params(params, compute_dtype=jnp.bfloat16):
    """Split fc3's weight into the halves applied to each branch, cast MXU
    operands to the compute dtype.  Biases stay f32 (added to the f32
    accumulator in-kernel).  Run once, outside the hot path."""
    (w1, b1, w2, b2, w3, b3, w4, b4) = params
    hidden = w1.shape[1]
    w3a = w3[:hidden, :]   # applied to branch-1 activations
    w3b = w3[hidden:, :]   # applied to branch-2 activations
    prepped = (
        w1.astype(compute_dtype),  b1.reshape(1, -1).astype(jnp.float32),
        w2.astype(compute_dtype),  b2.reshape(1, -1).astype(jnp.float32),
        w3a.astype(compute_dtype), w3b.astype(compute_dtype),
        b3.reshape(1, -1).astype(jnp.float32),
        w4.astype(compute_dtype),  b4.reshape(1, -1).astype(jnp.float32),
    )
    return prepped


# ---------------------------------------------------------------------------
# Forward wrapper
# ---------------------------------------------------------------------------
@partial(jax.jit, static_argnames=("block_b",))
def mlp2c_forward(input1, input2, prepped, block_b=256):
    w1, b1, w2, b2, w3a, w3b, b3, w4, b4 = prepped

    B = input1.shape[0]
    in1 = input1.shape[1]
    in2 = input2.shape[1]
    hid = w1.shape[1]
    h3 = w3a.shape[1]
    out_dim = w4.shape[1]

    # Batch tile: multiple of 8 (sublanes).  256 keeps the grid >= 8 steps at
    # B=2048 for pipeline depth on v6e / both v7x cores; per-step VMEM working
    # set is tiny (<0.5 MiB double-buffered), so VMEM capacity is a non-issue
    # on every generation — tune for grid depth / HBM bytes, not residency.
    tb = min(block_b, max(8, ((B + 7) // 8) * 8))
    b_pad = pl.cdiv(B, tb) * tb
    x1, x2 = input1, input2
    if b_pad != B:
        x1 = jnp.pad(x1, ((0, b_pad - B), (0, 0)))
        x2 = jnp.pad(x2, ((0, b_pad - B), (0, 0)))

    flops = 2 * b_pad * (in1 * hid + in2 * hid + 2 * hid * h3 + h3 * out_dim)
    bytes_accessed = b_pad * 4 * (in1 + in2 + out_dim)

    out = pl.pallas_call(
        mlp2c_kernel,
        out_shape=jax.ShapeDtypeStruct((b_pad, out_dim), input1.dtype),
        grid_spec=pltpu.PrefetchScalarGridSpec(
            num_scalar_prefetch=0,
            grid=(b_pad // tb,),
            in_specs=[
                pl.BlockSpec((tb, in1), lambda i: (i, 0)),   # activations: tiled over batch
                pl.BlockSpec((tb, in2), lambda i: (i, 0)),
                pl.BlockSpec((in1, hid), lambda i: (0, 0)),  # weights/biases: VMEM-resident
                pl.BlockSpec((1, hid),   lambda i: (0, 0)),
                pl.BlockSpec((in2, hid), lambda i: (0, 0)),
                pl.BlockSpec((1, hid),   lambda i: (0, 0)),
                pl.BlockSpec((hid, h3),  lambda i: (0, 0)),
                pl.BlockSpec((hid, h3),  lambda i: (0, 0)),
                pl.BlockSpec((1, h3),    lambda i: (0, 0)),
                pl.BlockSpec((h3, out_dim), lambda i: (0, 0)),
                pl.BlockSpec((1, out_dim),  lambda i: (0, 0)),
            ],
            out_specs=pl.BlockSpec((tb, out_dim), lambda i: (i, 0)),
        ),
        compiler_params=pltpu.CompilerParams(
            dimension_semantics=("parallel",)),  # shard batch across v7x's 2 TCs
        cost_estimate=pl.CostEstimate(
            flops=flops, transcendentals=0, bytes_accessed=bytes_accessed),
    )(x1, x2, w1, b1, w2, b2, w3a, w3b, b3, w4, b4)

    if b_pad != B:
        out = out[:B]
    return out


# ---------------------------------------------------------------------------
# Parameter init (mimics nn.Linear's U(-1/sqrt(fan_in), 1/sqrt(fan_in)))
# Weights stored transposed: (in_features, out_features).
# ---------------------------------------------------------------------------
def init_params(key, input_size1, input_size2, hidden_size, output_size):
    def linear(k, fan_in, fan_out):
        kw, kb = jax.random.split(k)
        bound = 1.0 / jnp.sqrt(fan_in)
        w = jax.random.uniform(kw, (fan_in, fan_out), jnp.float32, -bound, bound)
        b = jax.random.uniform(kb, (fan_out,), jnp.float32, -bound, bound)
        return w, b

    k1, k2, k3, k4 = jax.random.split(key, 4)
    w1, b1 = linear(k1, input_size1, hidden_size)
    w2, b2 = linear(k2, input_size2, hidden_size)
    w3, b3 = linear(k3, hidden_size * 2, 32)
    w4, b4 = linear(k4, 32, output_size)
    return (w1, b1, w2, b2, w3, b3, w4, b4)


# ---------------------------------------------------------------------------
# References
# ---------------------------------------------------------------------------
def reference_forward_f32(input1, input2, params):
    (w1, b1, w2, b2, w3, b3, w4, b4) = params
    x = jax.nn.relu(input1 @ w1 + b1)
    y = jax.nn.relu(input2 @ w2 + b2)
    z = jax.nn.relu(jnp.concatenate([x, y], axis=1) @ w3 + b3)
    return z @ w4 + b4


def reference_forward_bf16(input1, input2, prepped):
    """Same math as the kernel (bf16 operands, f32 accumulation) in plain JAX."""
    w1, b1, w2, b2, w3a, w3b, b3, w4, b4 = prepped
    cdt = w1.dtype
    h1 = jnp.maximum(jnp.dot(input1.astype(cdt), w1,
                             preferred_element_type=jnp.float32) + b1, 0.0)
    h2 = jnp.maximum(jnp.dot(input2.astype(cdt), w2,
                             preferred_element_type=jnp.float32) + b2, 0.0)
    z = jnp.maximum(
        jnp.dot(h1.astype(cdt), w3a, preferred_element_type=jnp.float32)
        + jnp.dot(h2.astype(cdt), w3b, preferred_element_type=jnp.float32)
        + b3, 0.0)
    o = jnp.dot(z.astype(cdt), w4, preferred_element_type=jnp.float32) + b4
    return o.astype(input1.dtype)


# ---------------------------------------------------------------------------
if __name__ == "__main__":
    # small shapes consistent with the module's forward
    batch = 8
    input_size1, input_size2 = 16, 24
    hidden_size, output_size = 32, 8

    key = jax.random.PRNGKey(0)
    k_in1, k_in2, k_par, k_big1, k_big2, k_odd1, k_odd2 = jax.random.split(key, 7)
    input1 = jax.random.normal(k_in1, (batch, input_size1), jnp.float32)
    input2 = jax.random.normal(k_in2, (batch, input_size2), jnp.float32)
    params = init_params(k_par, input_size1, input_size2, hidden_size, output_size)
    prepped = prepare_params(params)

    out = mlp2c_forward(input1, input2, prepped)
    out = jax.block_until_ready(out)
    assert out.shape == (batch, output_size)

    # exact-math check (kernel vs identical bf16/f32-acc math in plain JAX)
    ref_bf16 = reference_forward_bf16(input1, input2, prepped)
    assert jnp.allclose(out, ref_bf16, atol=1e-4, rtol=1e-4), "mismatch vs bf16 reference"

    # sanity check against the full-f32 PyTorch-equivalent math (bf16 tolerance)
    ref_f32 = reference_forward_f32(input1, input2, params)
    assert jnp.allclose(out, ref_f32, atol=5e-2, rtol=5e-2), "mismatch vs f32 reference"

    # exercise the multi-step batch grid (tb=256, grid=(8,), 'parallel' axis)
    big_b = 2048
    big1 = jax.random.normal(k_big1, (big_b, input_size1), jnp.float32)
    big2 = jax.random.normal(k_big2, (big_b, input_size2), jnp.float32)
    out_big = jax.block_until_ready(mlp2c_forward(big1, big2, prepped))
    ref_big = reference_forward_bf16(big1, big2, prepped)
    assert out_big.shape == (big_b, output_size)
    assert jnp.allclose(out_big, ref_big, atol=1e-4, rtol=1e-4), "mismatch at large batch"

    # exercise a batch that needs row padding (B not a multiple of 8)
    odd_b = 20
    odd1 = jax.random.normal(k_odd1, (odd_b, input_size1), jnp.float32)
    odd2 = jax.random.normal(k_odd2, (odd_b, input_size2), jnp.float32)
    out_odd = jax.block_until_ready(mlp2c_forward(odd1, odd2, prepped))
    ref_odd = reference_forward_bf16(odd1, odd2, prepped)
    assert out_odd.shape == (odd_b, output_size)
    assert jnp.allclose(out_odd, ref_odd, atol=1e-4, rtol=1e-4), "mismatch at padded batch"

    print("KERNEL_OK")
</pallas_src>

<mosaic_0001>
module attributes {stable_mosaic.version = 11 : i64} {
  func.func @mlp2c_kernel(%arg0: i32, %arg1: memref<8x16xf32, #tpu.memory_space<vmem>>, %arg2: memref<8x24xf32, #tpu.memory_space<vmem>>, %arg3: memref<16x32xbf16, #tpu.memory_space<vmem>>, %arg4: memref<1x32xf32, #tpu.memory_space<vmem>>, %arg5: memref<24x32xbf16, #tpu.memory_space<vmem>>, %arg6: memref<1x32xf32, #tpu.memory_space<vmem>>, %arg7: memref<32x32xbf16, #tpu.memory_space<vmem>>, %arg8: memref<32x32xbf16, #tpu.memory_space<vmem>>, %arg9: memref<1x32xf32, #tpu.memory_space<vmem>>, %arg10: memref<32x8xbf16, #tpu.memory_space<vmem>>, %arg11: memref<1x8xf32, #tpu.memory_space<vmem>>, %arg12: memref<8x8xf32, #tpu.memory_space<vmem>>) attributes {dimension_semantics = [#tpu.dimension_semantics<parallel>], iteration_bounds = array<i64: 1>, scalar_prefetch = 0 : i64, scratch_operands = 0 : i64, tpu.core_type = #tpu.core_type<tc>, window_params = [{transform_indices = @transform_0, window_bounds = array<i64: 8, 16>}, {transform_indices = @transform_1, window_bounds = array<i64: 8, 24>}, {pipeline_mode = #tpu.pipeline_mode<synchronous>, transform_indices = @transform_2, window_bounds = array<i64: 16, 32>}, {pipeline_mode = #tpu.pipeline_mode<synchronous>, transform_indices = @transform_3, window_bounds = array<i64: 1, 32>}, {pipeline_mode = #tpu.pipeline_mode<synchronous>, transform_indices = @transform_4, window_bounds = array<i64: 24, 32>}, {pipeline_mode = #tpu.pipeline_mode<synchronous>, transform_indices = @transform_5, window_bounds = array<i64: 1, 32>}, {pipeline_mode = #tpu.pipeline_mode<synchronous>, transform_indices = @transform_6, window_bounds = array<i64: 32, 32>}, {pipeline_mode = #tpu.pipeline_mode<synchronous>, transform_indices = @transform_7, window_bounds = array<i64: 32, 32>}, {pipeline_mode = #tpu.pipeline_mode<synchronous>, transform_indices = @transform_8, window_bounds = array<i64: 1, 32>}, {pipeline_mode = #tpu.pipeline_mode<synchronous>, transform_indices = @transform_9, window_bounds = array<i64: 32, 8>}, {pipeline_mode = #tpu.pipeline_mode<synchronous>, transform_indices = @transform_10, window_bounds = array<i64: 1, 8>}, {transform_indices = @transform_11, window_bounds = array<i64: 8, 8>}]} {
    %c0 = arith.constant 0 : index
    %c0_0 = arith.constant 0 : index
    %0 = vector.load %arg1[%c0, %c0_0] : memref<8x16xf32, #tpu.memory_space<vmem>>, vector<8x16xf32>
    %1 = arith.truncf %0 : vector<8x16xf32> to vector<8x16xbf16>
    %c0_1 = arith.constant 0 : index
    %c0_2 = arith.constant 0 : index
    %2 = vector.load %arg2[%c0_1, %c0_2] : memref<8x24xf32, #tpu.memory_space<vmem>>, vector<8x24xf32>
    %3 = arith.truncf %2 : vector<8x24xf32> to vector<8x24xbf16>
    %c0_3 = arith.constant 0 : index
    %c0_4 = arith.constant 0 : index
    %4 = vector.load %arg3[%c0_3, %c0_4] : memref<16x32xbf16, #tpu.memory_space<vmem>>, vector<16x32xbf16>
    %cst = arith.constant dense<0.000000e+00> : vector<8x32xf32>
    %5 = tpu.matmul %1, %4, %cst {dimension_numbers = #tpu.dot_dimension_numbers<[1], [0], [0], [1], [0, 0, 1, 1], [], []>} : vector<8x16xbf16>, vector<16x32xbf16>, vector<8x32xf32> -> vector<8x32xf32>
    %c0_5 = arith.constant 0 : index
    %c0_6 = arith.constant 0 : index
    %6 = vector.load %arg4[%c0_5, %c0_6] : memref<1x32xf32, #tpu.memory_space<vmem>>, vector<1x32xf32>
    %7 = vector.broadcast %6 : vector<1x32xf32> to vector<8x32xf32>
    %8 = arith.addf %5, %7 : vector<8x32xf32>
    %cst_7 = arith.constant 0.000000e+00 : f32
    %9 = vector.broadcast %cst_7 : f32 to vector<8x32xf32>
    %10 = arith.maximumf %8, %9 : vector<8x32xf32>
    %c0_8 = arith.constant 0 : index
    %c0_9 = arith.constant 0 : index
    %11 = vector.load %arg5[%c0_8, %c0_9] : memref<24x32xbf16, #tpu.memory_space<vmem>>, vector<24x32xbf16>
    %cst_10 = arith.constant dense<0.000000e+00> : vector<8x32xf32>
    %12 = tpu.matmul %3, %11, %cst_10 {dimension_numbers = #tpu.dot_dimension_numbers<[1], [0], [0], [1], [0, 0, 1, 1], [], []>} : vector<8x24xbf16>, vector<24x32xbf16>, vector<8x32xf32> -> vector<8x32xf32>
    %c0_11 = arith.constant 0 : index
    %c0_12 = arith.constant 0 : index
    %13 = vector.load %arg6[%c0_11, %c0_12] : memref<1x32xf32, #tpu.memory_space<vmem>>, vector<1x32xf32>
    %14 = vector.broadcast %13 : vector<1x32xf32> to vector<8x32xf32>
    %15 = arith.addf %12, %14 : vector<8x32xf32>
    %cst_13 = arith.constant 0.000000e+00 : f32
    %16 = vector.broadcast %cst_13 : f32 to vector<8x32xf32>
    %17 = arith.maximumf %15, %16 : vector<8x32xf32>
    %18 = arith.truncf %10 : vector<8x32xf32> to vector<8x32xbf16>
    %c0_14 = arith.constant 0 : index
    %c0_15 = arith.constant 0 : index
    %19 = vector.load %arg7[%c0_14, %c0_15] : memref<32x32xbf16, #tpu.memory_space<vmem>>, vector<32x32xbf16>
    %cst_16 = arith.constant dense<0.000000e+00> : vector<8x32xf32>
    %20 = tpu.matmul %18, %19, %cst_16 {dimension_numbers = #tpu.dot_dimension_numbers<[1], [0], [0], [1], [0, 0, 1, 1], [], []>} : vector<8x32xbf16>, vector<32x32xbf16>, vector<8x32xf32> -> vector<8x32xf32>
    %21 = arith.truncf %17 : vector<8x32xf32> to vector<8x32xbf16>
    %c0_17 = arith.constant 0 : index
    %c0_18 = arith.constant 0 : index
    %22 = vector.load %arg8[%c0_17, %c0_18] : memref<32x32xbf16, #tpu.memory_space<vmem>>, vector<32x32xbf16>
    %cst_19 = arith.constant dense<0.000000e+00> : vector<8x32xf32>
    %23 = tpu.matmul %21, %22, %cst_19 {dimension_numbers = #tpu.dot_dimension_numbers<[1], [0], [0], [1], [0, 0, 1, 1], [], []>} : vector<8x32xbf16>, vector<32x32xbf16>, vector<8x32xf32> -> vector<8x32xf32>
    %24 = arith.addf %20, %23 : vector<8x32xf32>
    %c0_20 = arith.constant 0 : index
    %c0_21 = arith.constant 0 : index
    %25 = vector.load %arg9[%c0_20, %c0_21] : memref<1x32xf32, #tpu.memory_space<vmem>>, vector<1x32xf32>
    %26 = vector.broadcast %25 : vector<1x32xf32> to vector<8x32xf32>
    %27 = arith.addf %24, %26 : vector<8x32xf32>
    %cst_22 = arith.constant 0.000000e+00 : f32
    %28 = vector.broadcast %cst_22 : f32 to vector<8x32xf32>
    %29 = arith.maximumf %27, %28 : vector<8x32xf32>
    %30 = arith.truncf %29 : vector<8x32xf32> to vector<8x32xbf16>
    %c0_23 = arith.constant 0 : index
    %c0_24 = arith.constant 0 : index
    %31 = vector.load %arg10[%c0_23, %c0_24] : memref<32x8xbf16, #tpu.memory_space<vmem>>, vector<32x8xbf16>
    %cst_25 = arith.constant dense<0.000000e+00> : vector<8x8xf32>
    %32 = tpu.matmul %30, %31, %cst_25 {dimension_numbers = #tpu.dot_dimension_numbers<[1], [0], [0], [1], [0, 0, 1, 1], [], []>} : vector<8x32xbf16>, vector<32x8xbf16>, vector<8x8xf32> -> vector<8x8xf32>
    %c0_26 = arith.constant 0 : index
    %c0_27 = arith.constant 0 : index
    %33 = vector.load %arg11[%c0_26, %c0_27] : memref<1x8xf32, #tpu.memory_space<vmem>>, vector<1x8xf32>
    %34 = vector.broadcast %33 : vector<1x8xf32> to vector<8x8xf32>
    %35 = arith.addf %32, %34 : vector<8x8xf32>
    %c0_28 = arith.constant 0 : index
    %c0_29 = arith.constant 0 : index
    %36 = vector.load %arg12[%c0_28, %c0_29] : memref<8x8xf32, #tpu.memory_space<vmem>>, vector<8x8xf32>
    tpu.vector_store %arg12[%c0_28, %c0_29], %35 {strides = array<i32>} : memref<8x8xf32, #tpu.memory_space<vmem>>, vector<8x8xf32>,
    return
  }
  func.func @transform_0(%arg0: i32) -> (i32, i32) {
    %c0_i32 = arith.constant 0 : i32
    %c0_i32_0 = arith.constant 0 : i32
    return %arg0, %c0_i32 : i32, i32
  }
  func.func @transform_1(%arg0: i32) -> (i32, i32) {
    %c0_i32 = arith.constant 0 : i32
    %c0_i32_0 = arith.constant 0 : i32
    return %arg0, %c0_i32 : i32, i32
  }
  func.func @transform_2(%arg0: i32) -> (i32, i32) {
    %c0_i32 = arith.constant 0 : i32
    %c0_i32_0 = arith.constant 0 : i32
    %c0_i32_1 = arith.constant 0 : i32
    return %c0_i32, %c0_i32_0 : i32, i32
  }
  func.func @transform_3(%arg0: i32) -> (i32, i32) {
    %c0_i32 = arith.constant 0 : i32
    %c0_i32_0 = arith.constant 0 : i32
    %c0_i32_1 = arith.constant 0 : i32
    return %c0_i32, %c0_i32_0 : i32, i32
  }
  func.func @transform_4(%arg0: i32) -> (i32, i32) {
    %c0_i32 = arith.constant 0 : i32
    %c0_i32_0 = arith.constant 0 : i32
    %c0_i32_1 = arith.constant 0 : i32
    return %c0_i32, %c0_i32_0 : i32, i32
  }
  func.func @transform_5(%arg0: i32) -> (i32, i32) {
    %c0_i32 = arith.constant 0 : i32
    %c0_i32_0 = arith.constant 0 : i32
    %c0_i32_1 = arith.constant 0 : i32
    return %c0_i32, %c0_i32_0 : i32, i32
  }
  func.func @transform_6(%arg0: i32) -> (i32, i32) {
    %c0_i32 = arith.constant 0 : i32
    %c0_i32_0 = arith.constant 0 : i32
    %c0_i32_1 = arith.constant 0 : i32
    return %c0_i32, %c0_i32_0 : i32, i32
  }
  func.func @transform_7(%arg0: i32) -> (i32, i32) {
    %c0_i32 = arith.constant 0 : i32
    %c0_i32_0 = arith.constant 0 : i32
    %c0_i32_1 = arith.constant 0 : i32
    return %c0_i32, %c0_i32_0 : i32, i32
  }
  func.func @transform_8(%arg0: i32) -> (i32, i32) {
    %c0_i32 = arith.constant 0 : i32
    %c0_i32_0 = arith.constant 0 : i32
    %c0_i32_1 = arith.constant 0 : i32
    return %c0_i32, %c0_i32_0 : i32, i32
  }
  func.func @transform_9(%arg0: i32) -> (i32, i32) {
    %c0_i32 = arith.constant 0 : i32
    %c0_i32_0 = arith.constant 0 : i32
    %c0_i32_1 = arith.constant 0 : i32
    return %c0_i32, %c0_i32_0 : i32, i32
  }
  func.func @transform_10(%arg0: i32) -> (i32, i32) {
    %c0_i32 = arith.constant 0 : i32
    %c0_i32_0 = arith.constant 0 : i32
    %c0_i32_1 = arith.constant 0 : i32
    return %c0_i32, %c0_i32_0 : i32, i32
  }
  func.func @transform_11(%arg0: i32) -> (i32, i32) {
    %c0_i32 = arith.constant 0 : i32
    %c0_i32_0 = arith.constant 0 : i32
    return %arg0, %c0_i32 : i32, i32
  }
}

</mosaic_0001>

<bundles_post_ra>
// kernel: mlp2c_forward.1
= control target key start
LH: loop header
LB: loop body
LE: loop exit
PB: predicated region body
PF: predicated region fallthrough
CT: control target
= control target key end

     0   :  { %16 = vsyncpa [#allocation3], 0  ;;  %s860_s0 = inlined_call_operand.hbm [shape: f32[8,16], index: 0, kind: input, shape index: {}]   ;;  %s861_s1 = inlined_call_operand.hbm [shape: f32[8,24], index: 1, kind: input, shape index: {}]   ;;  %s862_s2 = inlined_call_operand.hbm [shape: bf16[16,32], index: 2, kind: input, shape index: {}]   ;;  %s863_s3 = inlined_call_operand.hbm [shape: f32[1,32], index: 3, kind: input, shape index: {}]   ;;  %s864_s4 = inlined_call_operand.hbm [shape: bf16[24,32], index: 4, kind: input, shape index: {}]   ;;  %s865_s5 = inlined_call_operand.hbm [shape: f32[1,32], index: 5, kind: input, shape index: {}]   ;;  %s866_s6 = inlined_call_operand.vmem [shape: bf16[32,32], index: 6, kind: input, shape index: {}]   ;;  %s867_s7 = inlined_call_operand.vmem [shape: bf16[32,32], index: 7, kind: input, shape index: {}]   ;;  %s868_s8 = inlined_call_operand.hbm [shape: f32[1,32], index: 8, kind: input, shape index: {}]   ;;  %s869_s9 = inlined_call_operand.vmem [shape: bf16[32,8], index: 9, kind: input, shape index: {}]   ;;  %s870_s10 = inlined_call_operand.vmem [shape: f32[1,8], index: 10, kind: input, shape index: {}]   ;;  %s871_s11 = inlined_call_operand.hbm [shape: f32[8,8], index: 11, kind: output, shape index: {}]  }
   0x1   :  { %17 = vsyncpa [#allocation6], 0 }
   0x2   :  { %18 = vsyncpa [#allocation9], 0 }
   0x3   :  { %19 = vsyncpa [#allocation12], 0 }
   0x4   :  { %20 = vsyncpa [#allocation4], 0  ;;  %s735_s17 = smov [#allocation5]   ;;  %s736_s19 = smov [#allocation8]  }
   0x5   :  { %s37_s18 = sshll.u32 %s735_s17, 4  ;;  %s59_s20 = sshll.u32 %s736_s19, 4  ;;  %s38_s18 = int_to_ptr.vmem [resolvable:$true] %s37_s18  ;;  %s60_s20 = int_to_ptr.vmem [resolvable:$true] %s59_s20 }
   0x6   :  { %s573_s21 = scalar_lea.vmem %s38_s18, 128  ;;  %p578_p1 = scmp.lt.s32.totalorder %s38_s18, %s38_s18 }
   0x7   :  { %p574_p0 = scmp.ne.s32.totalorder %s38_s18, %s573_s21  ;;  %p579_p2 = scmp.lt.s32.totalorder %s573_s21, %s573_s21 }
   0x9   :  { %p580_p3 = por %p579_p2, %p578_p1 }
   0xb   :  { %p581_p4 = pnand %p580_p3, %p574_p0 }
   0xd   :  { %584 = shalt.err (!%p581_p4)
}
   0xe   :  { %40 = dma.hbm_to_vmem [thread:$0]  %s861_s1, 128, %s38_s18, [#allocation6]  }
   0xf   :  { %s593_s24 = scalar_lea.vmem %s60_s20, 16  ;;  %s597_s25 = scalar_lea.vmem %s60_s20, 32 }
  0x10   :  { %p594_p5 = scmp.ne.s32.totalorder %s60_s20, %s593_s24  ;;  %p598_p6 = scmp.lt.s32.totalorder %s60_s20, %s60_s20 }
  0x11   :  { %p599_p7 = scmp.lt.s32.totalorder %s597_s25, %s593_s24 }
  0x13   :  { %p600_p8 = por %p599_p7, %p598_p6 }
  0x15   :  { %p601_p9 = pnand %p600_p8, %p594_p5 }
  0x17   :  { %604 = shalt.err (!%p601_p9)
}
  0x18   :  { %62 = dma.hbm_to_vmem [thread:$0]  %s863_s3, 16, %s60_s20, [#allocation9]  }
  0x19   :  { %s737_s28 = smov [#allocation11]   ;;  %s738_s30 = smov [#allocation2]  }
  0x1a   :  { %s81_s29 = sshll.u32 %s737_s28, 4  ;;  %s27_s12 = sshll.u32 %s738_s30, 4  ;;  %s82_s29 = int_to_ptr.vmem [resolvable:$true] %s81_s29  ;;  %s28_s12 = int_to_ptr.vmem [resolvable:$true] %s27_s12 }
  0x1b   :  { %s613_s13 = scalar_lea.vmem %s82_s29, 16  ;;  %s617_s1 = scalar_lea.vmem %s82_s29, 32 }
  0x1c   :  { %p614_p10 = scmp.ne.s32.totalorder %s82_s29, %s613_s13  ;;  %p618_p11 = scmp.lt.s32.totalorder %s82_s29, %s82_s29 }
  0x1d   :  { %p619_p12 = scmp.lt.s32.totalorder %s617_s1, %s613_s13 }
  0x1f   :  { %p620_p13 = por %p619_p12, %p618_p11 }
  0x21   :  { %p621_p0 = pnand %p620_p13, %p614_p10 }
  0x23   :  { %624 = shalt.err (!%p621_p0)
}
  0x24   :  { %84 = dma.hbm_to_vmem [thread:$0]  %s865_s5, 16, %s82_s29, [#allocation12]  }
  0x25   :  { %s633_s16 = scalar_lea.vmem %s28_s12, 128  ;;  %p638_p2 = scmp.lt.s32.totalorder %s28_s12, %s28_s12 }
  0x26   :  { %p634_p1 = scmp.ne.s32.totalorder %s28_s12, %s633_s16  ;;  %p639_p3 = scmp.lt.s32.totalorder %s633_s16, %s633_s16 }
  0x28   :  { %p640_p4 = por %p639_p3, %p638_p2 }
  0x2a   :  { %p641_p5 = pnand %p640_p4, %p634_p1 }
  0x2c   :  { %644 = shalt.err (!%p641_p5)
}
  0x2d   :  { %30 = dma.hbm_to_vmem [thread:$0]  %s860_s0, 128, %s28_s12, [#allocation3]  }
  0x2e   :  { %s739_s18 = smov [#allocation7]  }
  0x2f   :  { %s46_s19 = sshll.u32 %s739_s18, 4  ;;  %s47_s19 = int_to_ptr.vmem [resolvable:$true] %s46_s19 }
  0x30   :  { %s653_s20 = scalar_lea.vmem %s47_s19, 128  ;;  %p658_p7 = scmp.lt.s32.totalorder %s47_s19, %s47_s19 }
  0x31   :  { %p654_p6 = scmp.ne.s32.totalorder %s47_s19, %s653_s20  ;;  %p659_p8 = scmp.lt.s32.totalorder %s653_s20, %s653_s20 }
  0x33   :  { %p660_p9 = por %p659_p8, %p658_p7 }
  0x35   :  { %p661_p10 = pnand %p660_p9, %p654_p6 }
  0x37   :  { %664 = shalt.err (!%p661_p10)
}
  0x38   :  { %s740_s5 = smov 64   ;;  %s741_s21 = smov 4  }
  0x39   :  { %52 = dma.hbm_to_vmem [thread:$0]  %s862_s2, 128, %s47_s19, [#allocation6], %s740_s5, %s740_s5, %s741_s21  }
  0x3a   :  { %s742_s24 = smov [#allocation10]   ;;  %s743_s0 = smov [#allocation13]  }
  0x3b   :  { %s68_s25 = sshll.u32 %s742_s24, 4  ;;  %s95_s26 = sshll.u32 %s743_s0, 4  ;;  %s69_s25 = int_to_ptr.vmem [resolvable:$true] %s68_s25  ;;  %s96_s26 = int_to_ptr.vmem [resolvable:$true] %s95_s26 }
  0x3c   :  { %s673_s27 = scalar_lea.vmem %s69_s25, 192  ;;  %p678_p12 = scmp.lt.s32.totalorder %s69_s25, %s69_s25 }
  0x3d   :  { %p674_p11 = scmp.ne.s32.totalorder %s69_s25, %s673_s27  ;;  %p679_p13 = scmp.lt.s32.totalorder %s673_s27, %s673_s27 }
  0x3f   :  { %p680_p0 = por %p679_p13, %p678_p12 }
  0x41   :  { %p681_p1 = pnand %p680_p0, %p674_p11 }
  0x43   :  { %684 = shalt.err (!%p681_p1)
}
  0x44   :  { %74 = dma.hbm_to_vmem [thread:$0]  %s864_s4, 192, %s69_s25, [#allocation9], %s740_s5, %s740_s5, %s741_s21  }
  0x45   :  { %s693_s30 = scalar_lea.vmem %s96_s26, 16  ;;  %s697_s2 = scalar_lea.vmem %s96_s26, 32 }
  0x46   :  { %p694_p2 = scmp.ne.s32.totalorder %s96_s26, %s693_s30  ;;  %p698_p3 = scmp.lt.s32.totalorder %s96_s26, %s96_s26 }
  0x47   :  { %p699_p4 = scmp.lt.s32.totalorder %s697_s2, %s693_s30 }
  0x49   :  { %p700_p5 = por %p699_p4, %p698_p3 }
  0x4b   :  { %p701_p6 = pnand %p700_p5, %p694_p2 }
  0x4d   :  { %704 = shalt.err (!%p701_p6)
}
  0x4e   :  { %98 = dma.hbm_to_vmem [thread:$0]  %s868_s8, 16, %s96_s26, [#allocation12]  }
  0x4f   :  { %725 = dma.done.wait [#allocation3], 128  }
  0x50   :  { %726 = vsyncadd [#allocation3], 4294967168 }
  0x51   :  { %727 = dma.done.wait [#allocation6], 256  }
  0x52   :  { %728 = vsyncadd [#allocation6], 4294967040 }
  0x53   :  { %729 = dma.done.wait [#allocation9], 208  }
  0x54   :  { %730 = vsyncadd [#allocation9], 4294967088 }
  0x55   :  { %731 = dma.done.wait [#allocation12], 32  }
  0x56   :  { %732 = vsyncadd [#allocation12], 4294967264  ;;  %v744_v0 = vmov 0.0   ;;  %vm745_vm0 = vmmov 0   ;;  %v556_v1 = vld [vmem:[#allocation7] sm:$0xff]   ;;  %vm212_vm1 = vcmask 1043456  }
  0x57   :  { %506 = vmatprep.subr.bf16.mxu0 %v744_v0  ;;  %512 = vmatprep.subr.bf16.mxu1 %v744_v0  ;;  %v557_v2 = vld [vmem:[#allocation10 + $0x8] ss:$0 sps:$4 sm:$0xff]   ;;  %vm144_vm2 = vcmask 130048   ;;  %v558_v6 = vld [vmem:[#allocation10] sm:$0xff]   ;;  %v127_v7 = vld [vmem:[#allocation5] sm:$0xff]  ;;  %vm208_vm3 = vcmask 195584  }
  0x58   :  { %508 = vmatprep.mubr.msk.bf16.mxu0 %vm745_vm0, %v744_v0  ;;  %516 = vmatprep.mubr.msk.bf16.mxu1 %vm745_vm0, %v744_v0  ;;  %v125_v3 = vld [vmem:[#allocation2] sm:$0xff]  ;;  %v214_v5 = vsel %vm212_vm1, %v557_v2, 0  ;;  %v128_v8 = vpack.c.bf16 %v127_v7, %v127_v7  ;;  %v559_v9 = vld [vmem:[%s866_s6 + $0x8] sm:$0xff]   ;;  %v474_v13 = vld [vmem:[#allocation8] ss:$0 sm:$0xff]  ;;  %vm279_vm4 = vcmask 261120  }
  0x59   :  { %507 = vmatpush3.bf16.msra.mxu0 %v556_v1  ;;  %v126_v4 = vpack.c.bf16 %v125_v3, %v125_v3  ;;  %513 = vmatpush3.bf16.msra.mxu1 %v214_v5  ;;  %v561_v10 = vld [vmem:[%s866_s6] sm:$0xff]   ;;  %v560_v11 = vld [vmem:[%s867_s7 + $0x8] sm:$0xff]   ;;  %vm454_vm5 = vcmask 64512  }
  0x5a   :  { %520 = vmatprep.subr.bf16.mxu0 %v744_v0  ;;  %514 = vmatprep.subr.bf16.mxu1 %v744_v0  ;;  %v562_v12 = vld [vmem:[%s867_s7] sm:$0xff]   ;;  %v563_v29 = vld [vmem:[%s869_s9 + $0x8] sm:$0xff]  }
  0x5b   :  { %v477_v19 = vld [vmem:[#allocation11] ss:$0 sm:$0xff]  ;;  %v487_v35 = vld [vmem:[#allocation13] ss:$0 sm:$0xff]  ;;  %v488_v44 = vld [vmem:[%s870_s10] ss:$0 sm:$0xff] }
  0x5c   :  { %509 = vmatmul.mubr.msk.bf16.vlgmr.msra.gmra.mxu0 %vm144_vm2, %v126_v4  ;;  %v564_v30 = vld [vmem:[%s869_s9] sm:$0xff]   ;;  %s746_s9 = smov [#allocation14]  }
  0x5d   :  { %524 = vmatprep.mubr.msk.bf16.mxu0 %vm745_vm0, %v744_v0  ;;  %515 = vmatpush3.bf16.msra.mxu1 %v558_v6  ;;  %s462_s21 = sshll.u32 %s746_s9, 4  ;;  %s463_s21 = int_to_ptr.vmem [resolvable:$true] %s462_s21 }
  0x5e   :  { %528 = vmatprep.subr.bf16.mxu1 %v744_v0  ;;  %521 = vmatpush3.bf16.msra.mxu0 %v560_v11  ;;  %s705_s22 = scalar_lea.vmem %s463_s21, 128  ;;  %p710_p8 = scmp.lt.s32.totalorder %s463_s21, %s463_s21 }
  0x5f   :  { %522 = vmatprep.subr.bf16.mxu0 %v744_v0  ;;  %p706_p7 = scmp.ne.s32.totalorder %s463_s21, %s705_s22  ;;  %p711_p9 = scmp.lt.s32.totalorder %s705_s22, %s705_s22 }
  0x60   :  { %517 = vmatmul.mubr.msk.bf16.vlgmr.msra.gmra.mxu1 %vm208_vm3, %v128_v8 }
  0x61   :  { %532 = vmatprep.mubr.msk.bf16.mxu1 %vm745_vm0, %v744_v0  ;;  %529 = vmatpush3.bf16.msra.mxu1 %v559_v9  ;;  %p712_p10 = por %p711_p9, %p710_p8 }
  0x62   :  { %530 = vmatprep.subr.bf16.mxu1 %v744_v0  ;;  %523 = vmatpush3.bf16.msra.mxu0 %v562_v12 }
  0x63   :  { %536 = vmatprep.subr.bf16.mxu0 %v744_v0  ;;  %p713_p11 = pnand %p712_p10, %p706_p7 }
  0x65   :  { %531 = vmatpush3.bf16.msra.mxu1 %v561_v10 }
 0x11c   :  { %v182_v14 = vpop.f32.mrf.mxu0 }
 0x11d   :  { %v183_v15 = vadd.f32 %v474_v13, %v182_v14 }
 0x11e   :  { %v510_v16 = vpop.f32.mrf.mxu0 }
 0x11f   :  { %v188_v17 = vmax.f32 %v183_v15, 0.0 }
 0x120   :  { %v185_v18 = vpop.f32.mrf.mxu0  ;;  %v250_v21 = vpop.f32.mrf.mxu1 }
 0x121   :  { %v257_v20 = vpack.c.bf16 %v188_v17, %v188_v17  ;;  %v251_v23 = vadd.f32 %v477_v19, %v250_v21 }
 0x122   :  { %v511_v22 = vpop.f32.mrf.mxu0  ;;  %v518_v24 = vpop.f32.mrf.mxu1 }
 0x123   :  { %533 = vmatmul.mubr.msk.bf16.vlgmr.msra.gmra.mxu1 %vm279_vm4, %v257_v20  ;;  %v256_v25 = vmax.f32 %v251_v23, 0.0 }
 0x124   :  { %v253_v26 = vpop.f32.mrf.mxu1 }
 0x125   :  { %v262_v27 = vpack.c.bf16 %v256_v25, %v256_v25 }
 0x126   :  { %v519_v28 = vpop.f32.mrf.mxu1 }
 0x127   :  { %525 = vmatmul.mubr.msk.bf16.vlgmr.msra.gmra.mxu0 %vm279_vm4, %v262_v27 }
 0x128   :  { %540 = vmatprep.mubr.msk.bf16.mxu0 %vm745_vm0, %v744_v0  ;;  %537 = vmatpush3.bf16.msra.mxu0 %v563_v29 }
 0x129   :  { %538 = vmatprep.subr.bf16.mxu0 %v744_v0 }
 0x12c   :  { %539 = vmatpush3.bf16.msra.mxu0 %v564_v30 }
 0x1e3   :  { %v372_v31 = vpop.f32.mrf.mxu1 }
 0x1e5   :  { %v534_v32 = vpop.f32.mrf.mxu1 }
 0x1e7   :  { %v375_v33 = vpop.f32.mrf.mxu1  ;;  %v317_v34 = vpop.f32.mrf.mxu0 }
 0x1e8   :  { %v373_v37 = vadd.f32 %v372_v31, %v317_v34 }
 0x1e9   :  { %v535_v36 = vpop.f32.mrf.mxu1  ;;  %v526_v38 = vpop.f32.mrf.mxu0 }
 0x1ea   :  { %v385_v39 = vadd.f32 %v487_v35, %v373_v37 }
 0x1eb   :  { %v320_v40 = vpop.f32.mrf.mxu0 }
 0x1ec   :  { %v386_v41 = vmax.f32 %v385_v39, 0.0 }
 0x1ed   :  { %v527_v42 = vpop.f32.mrf.mxu0 }
 0x1ee   :  { %v387_v43 = vpack.c.bf16 %v386_v41, %v386_v41 }
 0x1f0   :  { %541 = vmatmul.mubr.msk.bf16.vlgmr.msra.gmra.mxu0 %vm279_vm4, %v387_v43 }
 0x2b0   :  { %v448_v45 = vpop.f32.mrf.mxu0 }
 0x2b1   :  { %v449_v46 = vadd.f32 %v488_v44, %v448_v45 }
 0x2b2   :  { %v542_v47 = vpop.f32.mrf.mxu0 }
 0x2b3   :  { %455 = vst.msk [vmem:[#allocation14] sm:$0xff] %vm454_vm5, %v449_v46 }
 0x2b4   :  { %v451_v48 = vpop.f32.mrf.mxu0 }
 0x2b5   :  { %716 = shalt.err (!%p713_p11)
}
 0x2b6   :  { %465 = dma.vmem_to_hbm [thread:$0]  %s463_s21, 128, %s871_s11, [#allocation4]   ;;  %v543_v49 = vpop.f32.mrf.mxu0 }
 0x2b7   :  { %733 = dma.done.wait [#allocation4], 128  }
 0x2b8   :  { %734 = vsyncadd [#allocation4], 4294967168 }
 0x2b9   :  { %469 = vsyncpa [#allocation3], 1 }
 0x2ba   :  { %470 = vsyncpa [#allocation6], 1 }
 0x2bb   :  { %471 = vsyncpa [#allocation9], 1 }
 0x2bc   :  { %472 = vsyncpa [#allocation12], 1 }
 0x2bd   :  { %473 = vsyncpa [#allocation4], 1 }

</bundles_post_ra>
